<compile_context>
chip_gen: v7x
topology: tpu7x:2x2x1
jax: 0.10.0
libtpu: 0.0.40
codegen_flags: <defaults>
</compile_context>

<pallas_src>
import jax
import jax.numpy as jnp
from jax.experimental import pallas as pl
from jax.experimental.pallas import tpu as pltpu

_N_LAYER = 128  # hidden width hard-coded in the PyTorch Critic


def _critic_kernel(s_ref, a_ref, w1_ref, w2_ref, b12_ref, wo_ref, bo_ref, q_ref):
    # Hidden layer: two accumulating MXU dots (f32 accumulation) + fused bias.
    h = jnp.dot(s_ref[...], w1_ref[...], preferred_element_type=jnp.float32)
    h = h + jnp.dot(a_ref[...], w2_ref[...], preferred_element_type=jnp.float32)
    h = jax.nn.sigmoid(h + b12_ref[...])                      # EUP, f32

    # Output projection (N=1) on the VPU: q_m = sum_k h[m, k] * wo[k] + bo.
    hw = h * wo_ref[...]                                      # (tb, 128)
    tb = hw.shape[0]
    # Lane-dense relayout: group 128 batch rows per slab row so the store is a
    # full-lane vst rather than a masked [tb, 1] column store.
    hw3 = hw.reshape(tb // _N_LAYER, _N_LAYER, _N_LAYER)      # leading-dim split
    q = jnp.sum(hw3, axis=-1) + bo_ref[0]                     # (tb//128, 128)
    q_ref[...] = q.astype(q_ref.dtype)


def _round_up(x, m):
    return ((x + m - 1) // m) * m


def critic_forward(s, a, params, *, tile_b=8192, vmem_limit_bytes=None):
    """s: [B, state_dim], a: [B, action_dim] -> q: [B, 1] (float32)."""
    w1, b1, w2, b2, wo, bo = params
    B, state_dim = s.shape
    action_dim = a.shape[1]
    n_layer = w1.shape[1]
    assert n_layer == _N_LAYER and B >= 1

    # One-time, tiny weight-side fusion (no activation copies).
    b12 = (b1 + b2).reshape(1, n_layer).astype(jnp.float32)
    wo_row = wo.reshape(1, n_layer).astype(jnp.float32)
    bo_s = jnp.asarray(bo, jnp.float32).reshape(1)            # SMEM scalar
    w1 = w1.astype(s.dtype)
    w2 = w2.astype(a.dtype)

    # ---- batch tiling ----------------------------------------------------
    # tb is a multiple of 128 (lane-dense slab rows).  For multi-step grids tb
    # is a multiple of 1024 so the output block sublane dim stays 8-aligned.
    tile_b = max(1024, _round_up(tile_b, 1024))
    if B < 1024:
        tb = _round_up(B, 128)
        if tb > B:                                            # <= 120 rows, tiny
            s = jnp.pad(s, ((0, tb - B), (0, 0)))
            a = jnp.pad(a, ((0, tb - B), (0, 0)))
        grid_b = 1
    else:
        tb = min(tile_b, (B // 1024) * 1024)
        grid_b = pl.cdiv(B, tb)          # ragged tail -> Pallas boundary block
    slab_rows = grid_b * (tb // 128)

    if vmem_limit_bytes is None:
        # Double-buffered inputs are lane-padded to 128 lanes in VMEM; the f32
        # hidden activations spill to VMEM scratch for large tiles.
        in_bytes = 2 * tb * 128 * (s.dtype.itemsize + a.dtype.itemsize)
        scratch_bytes = 3 * tb * n_layer * 4
        out_bytes = 2 * slab_rows * 128 * 4 // max(grid_b, 1)
        vmem_limit_bytes = min(in_bytes + scratch_bytes + out_bytes + (4 << 20),
                               96 << 20)

    cost = pl.CostEstimate(
        flops=2 * B * (state_dim + action_dim) * n_layer + 3 * B * n_layer,
        transcendentals=B * n_layer,
        bytes_accessed=B * (state_dim * s.dtype.itemsize
                            + action_dim * a.dtype.itemsize) + B * 4,
    )

    q_slab = pl.pallas_call(
        _critic_kernel,
        out_shape=jax.ShapeDtypeStruct((slab_rows, 128), jnp.float32),
        grid_spec=pltpu.PrefetchScalarGridSpec(
            num_scalar_prefetch=0,
            grid=(grid_b,),
            in_specs=[
                pl.BlockSpec((tb, state_dim), lambda i: (i, 0)),    # s tile
                pl.BlockSpec((tb, action_dim), lambda i: (i, 0)),   # a tile
                pl.BlockSpec((state_dim, n_layer), lambda i: (0, 0)),
                pl.BlockSpec((action_dim, n_layer), lambda i: (0, 0)),
                pl.BlockSpec((1, n_layer), lambda i: (0, 0)),       # b1 + b2
                pl.BlockSpec((1, n_layer), lambda i: (0, 0)),       # wo row
                pl.BlockSpec(memory_space=pltpu.MemorySpace.SMEM),  # bo scalar
            ],
            out_specs=pl.BlockSpec((tb // 128, 128), lambda i: (i, 0)),
        ),
        compiler_params=pltpu.CompilerParams(
            dimension_semantics=("parallel",),
            vmem_limit_bytes=int(vmem_limit_bytes),
        ),
        cost_estimate=cost,
    )(s, a, w1, w2, b12, wo_row, bo_s)

    # Slab entry (r, c) holds q for batch index r*128 + c.
    return q_slab.reshape(-1)[:B].reshape(B, 1)


def init_params(key, state_dim, action_dim, n_layer=128):
    """Synthetic init mirroring the PyTorch module shapes.

    PyTorch nn.Linear weight is [out, in]; we store the transpose [in, out].
    Weights ~ N(0, 0.1) as in __init__; biases ~ U(-1/sqrt(in), 1/sqrt(in)).
    """
    k1, k2, k3, kb1, kb2, kb3 = jax.random.split(key, 6)
    w1 = 0.1 * jax.random.normal(k1, (state_dim, n_layer), jnp.float32)
    w2 = 0.1 * jax.random.normal(k2, (action_dim, n_layer), jnp.float32)
    wo = 0.1 * jax.random.normal(k3, (n_layer, 1), jnp.float32)
    b1 = jax.random.uniform(kb1, (1, n_layer), jnp.float32,
                            -1.0 / jnp.sqrt(state_dim), 1.0 / jnp.sqrt(state_dim))
    b2 = jax.random.uniform(kb2, (1, n_layer), jnp.float32,
                            -1.0 / jnp.sqrt(action_dim), 1.0 / jnp.sqrt(action_dim))
    bo = jax.random.uniform(kb3, (1, 1), jnp.float32,
                            -1.0 / jnp.sqrt(n_layer), 1.0 / jnp.sqrt(n_layer))
    return (w1, b1, w2, b2, wo, bo)


def critic_ref(s, a, params):
    """Pure-JAX reference for validation."""
    w1, b1, w2, b2, wo, bo = params
    h = jax.nn.sigmoid(s @ w1 + b1 + a @ w2 + b2)
    return h @ wo + bo


if __name__ == "__main__":
    key = jax.random.PRNGKey(0)
    k_s, k_a, k_p, k_s2, k_a2 = jax.random.split(key, 5)

    state_dim, action_dim = 16, 8
    params = init_params(k_p, state_dim, action_dim)

    # Small batch: single exact tile.
    batch = 8
    s = jax.random.normal(k_s, (batch, state_dim), jnp.float32)
    a = jax.random.normal(k_a, (batch, action_dim), jnp.float32)
    q = jax.block_until_ready(critic_forward(s, a, params))
    q_ref = critic_ref(s, a, params)
    assert q.shape == (batch, 1), q.shape
    assert jnp.allclose(q, q_ref, atol=1e-5, rtol=1e-5), (q, q_ref)

    # Ragged multi-tile grid: exercises pipelining, boundary block and the
    # lane-dense output slab (still small: 2000 x 16 f32).
    batch2 = 2000
    s2 = jax.random.normal(k_s2, (batch2, state_dim), jnp.float32)
    a2 = jax.random.normal(k_a2, (batch2, action_dim), jnp.float32)
    q2 = jax.block_until_ready(critic_forward(s2, a2, params, tile_b=1024))
    q2_ref = critic_ref(s2, a2, params)
    assert q2.shape == (batch2, 1), q2.shape
    assert jnp.allclose(q2, q2_ref, atol=1e-5, rtol=1e-5)

    print("KERNEL_OK")
</pallas_src>

<mosaic_0001>
module attributes {stable_mosaic.version = 11 : i64} {
  func.func @_critic_kernel(%arg0: i32, %arg1: memref<128x16xf32, #tpu.memory_space<vmem>>, %arg2: memref<128x8xf32, #tpu.memory_space<vmem>>, %arg3: memref<16x128xf32, #tpu.memory_space<vmem>>, %arg4: memref<8x128xf32, #tpu.memory_space<vmem>>, %arg5: memref<1x128xf32, #tpu.memory_space<vmem>>, %arg6: memref<1x128xf32, #tpu.memory_space<vmem>>, %arg7: memref<1xf32, #tpu.memory_space<smem>>, %arg8: memref<1x128xf32, #tpu.memory_space<vmem>>) attributes {dimension_semantics = [#tpu.dimension_semantics<parallel>], iteration_bounds = array<i64: 1>, scalar_prefetch = 0 : i64, scratch_operands = 0 : i64, tpu.core_type = #tpu.core_type<tc>, window_params = [{transform_indices = @transform_0, window_bounds = array<i64: 128, 16>}, {transform_indices = @transform_1, window_bounds = array<i64: 128, 8>}, {pipeline_mode = #tpu.pipeline_mode<synchronous>, transform_indices = @transform_2, window_bounds = array<i64: 16, 128>}, {pipeline_mode = #tpu.pipeline_mode<synchronous>, transform_indices = @transform_3, window_bounds = array<i64: 8, 128>}, {pipeline_mode = #tpu.pipeline_mode<synchronous>, transform_indices = @transform_4, window_bounds = array<i64: 1, 128>}, {pipeline_mode = #tpu.pipeline_mode<synchronous>, transform_indices = @transform_5, window_bounds = array<i64: 1, 128>}, {transform_indices = @transform_6, window_bounds = array<i64: 1>}, {transform_indices = @transform_7, window_bounds = array<i64: 1, 128>}]} {
    %c0 = arith.constant 0 : index
    %c0_0 = arith.constant 0 : index
    %0 = vector.load %arg1[%c0, %c0_0] : memref<128x16xf32, #tpu.memory_space<vmem>>, vector<128x16xf32>
    %c0_1 = arith.constant 0 : index
    %c0_2 = arith.constant 0 : index
    %1 = vector.load %arg3[%c0_1, %c0_2] : memref<16x128xf32, #tpu.memory_space<vmem>>, vector<16x128xf32>
    %cst = arith.constant dense<0.000000e+00> : vector<128x128xf32>
    %2 = tpu.matmul %0, %1, %cst {dimension_numbers = #tpu.dot_dimension_numbers<[1], [0], [0], [1], [0, 0, 1, 1], [], []>} : vector<128x16xf32>, vector<16x128xf32>, vector<128x128xf32> -> vector<128x128xf32>
    %c0_3 = arith.constant 0 : index
    %c0_4 = arith.constant 0 : index
    %3 = vector.load %arg2[%c0_3, %c0_4] : memref<128x8xf32, #tpu.memory_space<vmem>>, vector<128x8xf32>
    %c0_5 = arith.constant 0 : index
    %c0_6 = arith.constant 0 : index
    %4 = vector.load %arg4[%c0_5, %c0_6] : memref<8x128xf32, #tpu.memory_space<vmem>>, vector<8x128xf32>
    %cst_7 = arith.constant dense<0.000000e+00> : vector<128x128xf32>
    %5 = tpu.matmul %3, %4, %cst_7 {dimension_numbers = #tpu.dot_dimension_numbers<[1], [0], [0], [1], [0, 0, 1, 1], [], []>} : vector<128x8xf32>, vector<8x128xf32>, vector<128x128xf32> -> vector<128x128xf32>
    %6 = arith.addf %2, %5 : vector<128x128xf32>
    %c0_8 = arith.constant 0 : index
    %c0_9 = arith.constant 0 : index
    %7 = vector.load %arg5[%c0_8, %c0_9] : memref<1x128xf32, #tpu.memory_space<vmem>>, vector<1x128xf32>
    %8 = vector.broadcast %7 : vector<1x128xf32> to vector<128x128xf32>
    %9 = arith.addf %6, %8 : vector<128x128xf32>
    %10 = arith.negf %9 : vector<128x128xf32>
    %11 = math.exp %10 : vector<128x128xf32>
    %cst_10 = arith.constant 1.000000e+00 : f32
    %12 = vector.broadcast %cst_10 : f32 to vector<128x128xf32>
    %13 = arith.addf %12, %11 : vector<128x128xf32>
    %14 = arith.divf %12, %13 : vector<128x128xf32>
    %c0_11 = arith.constant 0 : index
    %c0_12 = arith.constant 0 : index
    %15 = vector.load %arg6[%c0_11, %c0_12] : memref<1x128xf32, #tpu.memory_space<vmem>>, vector<1x128xf32>
    %16 = vector.broadcast %15 : vector<1x128xf32> to vector<128x128xf32>
    %17 = arith.mulf %14, %16 : vector<128x128xf32>
    %18 = vector.shape_cast %17 : vector<128x128xf32> to vector<1x128x128xf32>
    %cst_13 = arith.constant dense<0.000000e+00> : vector<1x128xf32>
    %19 = vector.multi_reduction <add>, %18, %cst_13 [2] : vector<1x128x128xf32> to vector<1x128xf32>
    %c0_14 = arith.constant 0 : index
    %20 = memref.load %arg7[%c0_14] : memref<1xf32, #tpu.memory_space<smem>>
    %21 = vector.broadcast %20 : f32 to vector<1x128xf32>
    %22 = arith.addf %19, %21 : vector<1x128xf32>
    %c0_15 = arith.constant 0 : index
    %c0_16 = arith.constant 0 : index
    %23 = vector.load %arg8[%c0_15, %c0_16] : memref<1x128xf32, #tpu.memory_space<vmem>>, vector<1x128xf32>
    tpu.vector_store %arg8[%c0_15, %c0_16], %22 {strides = array<i32>} : memref<1x128xf32, #tpu.memory_space<vmem>>, vector<1x128xf32>,
    return
  }
  func.func @transform_0(%arg0: i32) -> (i32, i32) {
    %c0_i32 = arith.constant 0 : i32
    %c0_i32_0 = arith.constant 0 : i32
    return %arg0, %c0_i32 : i32, i32
  }
  func.func @transform_1(%arg0: i32) -> (i32, i32) {
    %c0_i32 = arith.constant 0 : i32
    %c0_i32_0 = arith.constant 0 : i32
    return %arg0, %c0_i32 : i32, i32
  }
  func.func @transform_2(%arg0: i32) -> (i32, i32) {
    %c0_i32 = arith.constant 0 : i32
    %c0_i32_0 = arith.constant 0 : i32
    %c0_i32_1 = arith.constant 0 : i32
    return %c0_i32, %c0_i32_0 : i32, i32
  }
  func.func @transform_3(%arg0: i32) -> (i32, i32) {
    %c0_i32 = arith.constant 0 : i32
    %c0_i32_0 = arith.constant 0 : i32
    %c0_i32_1 = arith.constant 0 : i32
    return %c0_i32, %c0_i32_0 : i32, i32
  }
  func.func @transform_4(%arg0: i32) -> (i32, i32) {
    %c0_i32 = arith.constant 0 : i32
    %c0_i32_0 = arith.constant 0 : i32
    %c0_i32_1 = arith.constant 0 : i32
    return %c0_i32, %c0_i32_0 : i32, i32
  }
  func.func @transform_5(%arg0: i32) -> (i32, i32) {
    %c0_i32 = arith.constant 0 : i32
    %c0_i32_0 = arith.constant 0 : i32
    %c0_i32_1 = arith.constant 0 : i32
    return %c0_i32, %c0_i32_0 : i32, i32
  }
  func.func @transform_6(%arg0: i32) -> i32 {
    %c0_i32 = arith.constant 0 : i32
    %c0_i32_0 = arith.constant 0 : i32
    return %c0_i32 : i32
  }
  func.func @transform_7(%arg0: i32) -> (i32, i32) {
    %c0_i32 = arith.constant 0 : i32
    %c0_i32_0 = arith.constant 0 : i32
    return %arg0, %c0_i32 : i32, i32
  }
}

</mosaic_0001>

<bundles_post_ra>
// kernel: tpu_custom_call.1
= control target key start
LH: loop header
LB: loop body
LE: loop exit
PB: predicated region body
PF: predicated region fallthrough
CT: control target
= control target key end

     0   :  { %vm63_vm0 = vcmask 64512   ;;  %vm257_vm1 = vcmask 130048   ;;  %s1323_s0 = inlined_call_operand.vmem [shape: f32[128,16], index: 0, kind: input, shape index: {}]   ;;  %s1324_s1 = inlined_call_operand.vmem [shape: f32[128,8], index: 1, kind: input, shape index: {}]   ;;  %s1325_s2 = inlined_call_operand.vmem [shape: f32[16,128], index: 2, kind: input, shape index: {}]   ;;  %s1326_s3 = inlined_call_operand.vmem [shape: f32[8,128], index: 3, kind: input, shape index: {}]   ;;  %s1327_s4 = inlined_call_operand.vmem [shape: f32[1,128], index: 4, kind: input, shape index: {}]   ;;  %s1328_s5 = inlined_call_operand.vmem [shape: f32[1,128], index: 5, kind: input, shape index: {}]   ;;  %s1329_s6 = inlined_call_operand.<no memory space> [shape: f32[1], index: 6, kind: input, shape index: {}]   ;;  %s1330_s7 = inlined_call_operand.hbm [shape: f32[1,128], index: 7, kind: output, shape index: {}]  }
   0x1   :  { %v44_v0 = vld [vmem:[%s1325_s2] sm:$0xff]  ;;  %v45_v1 = vld [vmem:[%s1325_s2 + $0x8] sm:$0xff]  ;;  %v48_v7 = vld [vmem:[%s1324_s1 + $0x10] sm:$0xff] }
   0x2   :  { %v62_v2 = vld [vmem:[%s1326_s3] sm:$0xff]  ;;  %v925_v3 = vpack.c.bf16 %v45_v1, %v44_v0  ;;  %v47_v5 = vld [vmem:[%s1324_s1 + $0x8] sm:$0xff]  ;;  %v49_v9 = vld [vmem:[%s1324_s1 + $0x18] sm:$0xff] }
   0x3   :  { %871 = vmatprep.subr.mxu1 %v62_v2  ;;  %v46_v4 = vld [vmem:[%s1324_s1] sm:$0xff]  ;;  %v29_v8 = vld [vmem:[%s1323_s0 + $0x8] sm:$0xff]  ;;  %v30_v10 = vld [vmem:[%s1323_s0 + $0x10] sm:$0xff] }
   0x4   :  { %v28_v6 = vld [vmem:[%s1323_s0] sm:$0xff]  ;;  %872 = vmatpush3.msra.mxu1 %v62_v2  ;;  %873 = vmatprep.mubr.msk.f32.mxu1 %vm63_vm0, %v46_v4  ;;  %v31_v12 = vld [vmem:[%s1323_s0 + $0x18] sm:$0xff]  ;;  %v51_v13 = vld [vmem:[%s1324_s1 + $0x28] sm:$0xff] }
   0x5   :  { %926 = vmatprep.subr.bf16.mxu0 %v925_v3  ;;  %874 = vmatmul.mubr.msk.f32.vlgmr.msra.gmra.mrb[0].mxu1 %vm63_vm0, %v47_v5  ;;  %v50_v11 = vld [vmem:[%s1324_s1 + $0x20] sm:$0xff]  ;;  %v52_v15 = vld [vmem:[%s1324_s1 + $0x30] sm:$0xff] }
   0x6   :  { %928 = vmatpush3.bf16.msra.mxu0 %v925_v3  ;;  %901 = vmatprep.mubr.msk.f32.mxu0 %vm257_vm1, %v28_v6  ;;  %v32_v14 = vld [vmem:[%s1323_s0 + $0x20] sm:$0xff] }
   0x7   :  { %876 = vmatprep.mubr.msk.f32.mxu1 %vm63_vm0, %v48_v7 }
   0x9   :  { %902 = vmatmul.mubr.msk.f32.vlgmr.msra.gmra.mrb[0].mxu0 %vm257_vm1, %v29_v8  ;;  %877 = vmatmul.mubr.msk.f32.gmra.mrb[2].mxu1 %vm63_vm0, %v49_v9 }
   0xa   :  { %904 = vmatprep.mubr.msk.f32.mxu0 %vm257_vm1, %v30_v10  ;;  %879 = vmatprep.mubr.msk.f32.mxu1 %vm63_vm0, %v50_v11 }
   0xd   :  { %905 = vmatmul.mubr.msk.f32.gmra.mrb[2].mxu0 %vm257_vm1, %v31_v12  ;;  %880 = vmatmul.mubr.msk.f32.gmra.mrb[4].mxu1 %vm63_vm0, %v51_v13 }
   0xe   :  { %13 = vsyncpa [#allocation4], 0  ;;  %907 = vmatprep.mubr.msk.f32.mxu0 %vm257_vm1, %v32_v14  ;;  %v33_v16 = vld [vmem:[%s1323_s0 + $0x28] sm:$0xff]  ;;  %882 = vmatprep.mubr.msk.f32.mxu1 %vm63_vm0, %v52_v15  ;;  %v53_v17 = vld [vmem:[%s1324_s1 + $0x38] sm:$0xff]  ;;  %vm670_vm2 = vcmask 130112   ;;  %vm677_vm3 = vcmask 195712  }
   0xf   :  { %v34_v18 = vld [vmem:[%s1323_s0 + $0x30] sm:$0xff]  ;;  %v54_v19 = vld [vmem:[%s1324_s1 + $0x40] sm:$0xff]  ;;  %v35_v20 = vld [vmem:[%s1323_s0 + $0x38] sm:$0xff]  ;;  %vm684_vm4 = vcmask 261312   ;;  %vm691_vm5 = vcmask 326912   ;;  %vm698_vm6 = vcmask 392512  }
  0x10   :  { %v55_v21 = vld [vmem:[%s1324_s1 + $0x48] sm:$0xff]  ;;  %v36_v22 = vld [vmem:[%s1323_s0 + $0x40] sm:$0xff]  ;;  %v56_v23 = vld [vmem:[%s1324_s1 + $0x50] sm:$0xff]  ;;  %vm705_vm7 = vcmask 458112   ;;  %vm712_vm8 = vcmask 523712   ;;  %vm719_vm9 = vcmask 589312  }
  0x11   :  { %908 = vmatmul.mubr.msk.f32.gmra.mrb[4].mxu0 %vm257_vm1, %v33_v16  ;;  %883 = vmatmul.mubr.msk.f32.gmra.mrb[6].mxu1 %vm63_vm0, %v53_v17  ;;  %v37_v24 = vld [vmem:[%s1323_s0 + $0x48] sm:$0xff]  ;;  %v57_v25 = vld [vmem:[%s1324_s1 + $0x58] sm:$0xff]  ;;  %v38_v26 = vld [vmem:[%s1323_s0 + $0x50] sm:$0xff]  ;;  %vm726_vm10 = vcmask 654912   ;;  %vm733_vm11 = vcmask 720512   ;;  %vm740_vm12 = vcmask 786112  }
  0x12   :  { %910 = vmatprep.mubr.msk.f32.mxu0 %vm257_vm1, %v34_v18  ;;  %885 = vmatprep.mubr.msk.f32.mxu1 %vm63_vm0, %v54_v19  ;;  %v58_v27 = vld [vmem:[%s1324_s1 + $0x60] sm:$0xff]  ;;  %v39_v28 = vld [vmem:[%s1323_s0 + $0x58] sm:$0xff]  ;;  %v59_v29 = vld [vmem:[%s1324_s1 + $0x68] sm:$0xff]  ;;  %vm747_vm13 = vcmask 851712   ;;  %vm754_vm14 = vcmask 917312   ;;  %vm761_vm15 = vcmask 982912  }
  0x13   :  { %v40_v30 = vld [vmem:[%s1323_s0 + $0x60] sm:$0xff]  ;;  %v60_v31 = vld [vmem:[%s1324_s1 + $0x70] sm:$0xff]  ;;  %v41_v32 = vld [vmem:[%s1323_s0 + $0x68] sm:$0xff] }
  0x14   :  { %v61_v33 = vld [vmem:[%s1324_s1 + $0x78] sm:$0xff]  ;;  %v42_v34 = vld [vmem:[%s1323_s0 + $0x70] sm:$0xff]  ;;  %v1215_v39 = vld [vmem:[%s1327_s4] ss:$0 sm:$0xff] }
  0x15   :  { %911 = vmatmul.mubr.msk.f32.gmra.mrb[6].mxu0 %vm257_vm1, %v35_v20  ;;  %886 = vmatmul.mubr.msk.f32.gmra.mrb[8].mxu1 %vm63_vm0, %v55_v21  ;;  %v43_v35 = vld [vmem:[%s1323_s0 + $0x78] sm:$0xff] }
  0x16   :  { %913 = vmatprep.mubr.msk.f32.mxu0 %vm257_vm1, %v36_v22  ;;  %888 = vmatprep.mubr.msk.f32.mxu1 %vm63_vm0, %v56_v23 }
  0x19   :  { %914 = vmatmul.mubr.msk.f32.gmra.mrb[8].mxu0 %vm257_vm1, %v37_v24  ;;  %889 = vmatmul.mubr.msk.f32.gmra.mrb[10].mxu1 %vm63_vm0, %v57_v25 }
  0x1a   :  { %916 = vmatprep.mubr.msk.f32.mxu0 %vm257_vm1, %v38_v26  ;;  %891 = vmatprep.mubr.msk.f32.mxu1 %vm63_vm0, %v58_v27 }
  0x1d   :  { %917 = vmatmul.mubr.msk.f32.gmra.mrb[10].mxu0 %vm257_vm1, %v39_v28  ;;  %892 = vmatmul.mubr.msk.f32.gmra.mrb[12].mxu1 %vm63_vm0, %v59_v29 }
  0x1e   :  { %919 = vmatprep.mubr.msk.f32.mxu0 %vm257_vm1, %v40_v30  ;;  %894 = vmatprep.mubr.msk.f32.mxu1 %vm63_vm0, %v60_v31 }
  0x21   :  { %920 = vmatmul.mubr.msk.f32.gmra.mrb[12].mxu0 %vm257_vm1, %v41_v32  ;;  %895 = vmatmul.mubr.msk.f32.gmra.mrb[14].mxu1 %vm63_vm0, %v61_v33  ;;  %vm768_vm0 = vcmask 1048512  }
  0x22   :  { %922 = vmatprep.mubr.msk.f32.mxu0 %vm257_vm1, %v42_v34 }
  0x25   :  { %923 = vmatmul.mubr.msk.f32.gmra.mrb[14].mxu0 %vm257_vm1, %v43_v35 }
  0xd8   :  { %v875_v36 = vpop.f32.mrb[0].mxu1 }
  0xd9   :  { %v178_v37 = vpop.f32.mrb[1].mxu1 }
  0xdc   :  { %v903_v38 = vpop.f32.mrb[0].mxu0  ;;  %v878_v40 = vpop.f32.mrb[2].mxu1 }
  0xdd   :  { %v378_v41 = vadd.f32 %v903_v38, %v875_v36  ;;  %v372_v42 = vpop.f32.mrb[1].mxu0  ;;  %v188_v43 = vpop.f32.mrb[3].mxu1 }
  0xde   :  { %v373_v44 = vadd.f32 %v372_v42, %v178_v37 }
  0xdf   :  { %v459_v45 = vadd.f32 %v1215_v39, %v378_v41 }
  0xe0   :  { %v458_v46 = vadd.f32 %v1215_v39, %v373_v44  ;;  %v906_v47 = vpop.f32.mrb[2].mxu0  ;;  %v881_v48 = vpop.f32.mrb[4].mxu1 }
  0xe1   :  { %v820_v49 = vmul.f32 -1.442695, %v459_v45  ;;  %v388_v50 = vadd.f32 %v906_v47, %v878_v40  ;;  %v382_v51 = vpop.f32.mrb[3].mxu0  ;;  %v198_v52 = vpop.f32.mrb[5].mxu1 }
  0xe2   :  { %v819_v53 = vmul.f32 -1.442695, %v458_v46  ;;  %v383_v54 = vadd.f32 %v382_v51, %v188_v43 }
  0xe3   :  { %946 = vpow2.f32 %v820_v49  ;;  %v461_v55 = vadd.f32 %v1215_v39, %v388_v50 }
  0xe4   :  { %948 = vpow2.f32 %v819_v53  ;;  %v460_v56 = vadd.f32 %v1215_v39, %v383_v54  ;;  %v909_v57 = vpop.f32.mrb[4].mxu0  ;;  %v884_v58 = vpop.f32.mrb[6].mxu1 }
  0xe5   :  { %v822_v59 = vmul.f32 -1.442695, %v461_v55  ;;  %v398_v60 = vadd.f32 %v909_v57, %v881_v48  ;;  %v392_v61 = vpop.f32.mrb[5].mxu0  ;;  %v208_v62 = vpop.f32.mrb[7].mxu1  ;;  %v1234_v57 = vld [vmem:[%s1328_s5] ss:$0 sm:$0xff] }
  0xe6   :  { %v821_v63 = vmul.f32 -1.442695, %v460_v56  ;;  %v393_v0 = vadd.f32 %v392_v61, %v198_v52 }
  0xe7   :  { %950 = vpow2.f32 %v822_v59  ;;  %v463_v1 = vadd.f32 %v1215_v39, %v398_v60 }
  0xe8   :  { %952 = vpow2.f32 %v821_v63  ;;  %v462_v2 = vadd.f32 %v1215_v39, %v393_v0  ;;  %v912_v3 = vpop.f32.mrb[6].mxu0  ;;  %v887_v4 = vpop.f32.mrb[8].mxu1 }
  0xe9   :  { %v824_v5 = vmul.f32 -1.442695, %v463_v1  ;;  %v408_v6 = vadd.f32 %v912_v3, %v884_v58  ;;  %v402_v7 = vpop.f32.mrb[7].mxu0  ;;  %v218_v8 = vpop.f32.mrb[9].mxu1 }
  0xea   :  { %v823_v9 = vmul.f32 -1.442695, %v462_v2  ;;  %v403_v10 = vadd.f32 %v402_v7, %v208_v62 }
  0xeb   :  { %954 = vpow2.f32 %v824_v5  ;;  %v465_v11 = vadd.f32 %v1215_v39, %v408_v6 }
  0xec   :  { %956 = vpow2.f32 %v823_v9  ;;  %v464_v12 = vadd.f32 %v1215_v39, %v403_v10  ;;  %v915_v13 = vpop.f32.mrb[8].mxu0  ;;  %v890_v14 = vpop.f32.mrb[10].mxu1 }
  0xed   :  { %v947_v15 = vpop.eup %946  ;;  %v826_v16 = vmul.f32 -1.442695, %v465_v11  ;;  %v418_v17 = vadd.f32 %v915_v13, %v887_v4  ;;  %v412_v18 = vpop.f32.mrb[9].mxu0 }
  0xee   :  { %v228_v19 = vpop.f32.mrb[11].mxu1  ;;  %v949_v20 = vpop.eup %948  ;;  %v523_v21 = vadd.f32 1.0, %v947_v15  ;;  %v825_v22 = vmul.f32 -1.442695, %v464_v12  ;;  %v413_v23 = vadd.f32 %v412_v18, %v218_v8 }
  0xef   :  { %v522_v24 = vadd.f32 1.0, %v949_v20  ;;  %958 = vpow2.f32 %v826_v16  ;;  %v467_v25 = vadd.f32 %v1215_v39, %v418_v17 }
  0xf0   :  { %960 = vrcp.f32 %v523_v21  ;;  %v466_v26 = vadd.f32 %v1215_v39, %v413_v23  ;;  %v918_v27 = vpop.f32.mrb[10].mxu0  ;;  %v893_v28 = vpop.f32.mrb[12].mxu1 }
  0xf1   :  { %v951_v29 = vpop.eup %950  ;;  %962 = vrcp.f32 %v522_v24  ;;  %v828_v30 = vmul.f32 -1.442695, %v467_v25  ;;  %v428_v31 = vadd.f32 %v918_v27, %v890_v14  ;;  %v422_v32 = vpop.f32.mrb[11].mxu0 }
  0xf2   :  { %v238_v33 = vpop.f32.mrb[13].mxu1  ;;  %v953_v34 = vpop.eup %952  ;;  %v525_v35 = vadd.f32 1.0, %v951_v29  ;;  %964 = vpow2.f32 %v825_v22  ;;  %v827_v36 = vmul.f32 -1.442695, %v466_v26  ;;  %v423_v37 = vadd.f32 %v422_v32, %v228_v19 }
  0xf3   :  { %v524_v38 = vadd.f32 1.0, %v953_v34  ;;  %966 = vpow2.f32 %v828_v30  ;;  %v469_v40 = vadd.f32 %v1215_v39, %v428_v31 }
  0xf4   :  { %968 = vrcp.f32 %v525_v35  ;;  %v468_v41 = vadd.f32 %v1215_v39, %v423_v37  ;;  %v921_v42 = vpop.f32.mrb[12].mxu0  ;;  %v896_v43 = vpop.f32.mrb[14].mxu1 }
  0xf5   :  { %v955_v44 = vpop.eup %954  ;;  %970 = vrcp.f32 %v524_v38  ;;  %v830_v45 = vmul.f32 -1.442695, %v469_v40  ;;  %v438_v46 = vadd.f32 %v921_v42, %v893_v28  ;;  %v432_v47 = vpop.f32.mrb[13].mxu0 }
  0xf6   :  { %v248_v48 = vpop.f32.mrb[15].mxu1  ;;  %v957_v49 = vpop.eup %956  ;;  %v527_v50 = vadd.f32 1.0, %v955_v44  ;;  %972 = vpow2.f32 %v827_v36  ;;  %v829_v51 = vmul.f32 -1.442695, %v468_v41  ;;  %v433_v52 = vadd.f32 %v432_v47, %v238_v33 }
  0xf7   :  { %v526_v53 = vadd.f32 1.0, %v957_v49  ;;  %974 = vpow2.f32 %v830_v45  ;;  %v471_v54 = vadd.f32 %v1215_v39, %v438_v46 }
  0xf8   :  { %976 = vrcp.f32 %v527_v50  ;;  %v470_v55 = vadd.f32 %v1215_v39, %v433_v52  ;;  %v924_v56 = vpop.f32.mrb[14].mxu0 }
  0xf9   :  { %v959_v58 = vpop.eup %958  ;;  %978 = vrcp.f32 %v526_v53  ;;  %v832_v59 = vmul.f32 -1.442695, %v471_v54  ;;  %v448_v60 = vadd.f32 %v924_v56, %v896_v43  ;;  %v442_v61 = vpop.f32.mrb[15].mxu0 }
  0xfa   :  { %v961_v62 = vpop.eup %960  ;;  %v529_v63 = vadd.f32 1.0, %v959_v58  ;;  %980 = vpow2.f32 %v829_v51  ;;  %v831_v0 = vmul.f32 -1.442695, %v470_v55  ;;  %v443_v1 = vadd.f32 %v442_v61, %v248_v48 }
  0xfb   :  { %v963_v2 = vpop.eup %962  ;;  %982 = vpow2.f32 %v832_v59  ;;  %v473_v3 = vadd.f32 %v1215_v39, %v448_v60  ;;  %v578_v4 = vmul.f32 %v961_v62, %v1234_v57  ;;  %v659_v55 = vlaneseq }
  0xfc   :  { %v965_v5 = vpop.eup %964  ;;  %v472_v6 = vadd.f32 %v1215_v39, %v443_v1  ;;  %984 = vpow2.f32 %v831_v0  ;;  %v577_v15 = vmul.f32 %v963_v2, %v1234_v57  ;;  %v1262_v61 = vstv %s1329_s6  ;;  %s1034_s6 = smov [#allocation3]  }
  0xfd   :  { %v967_v7 = vpop.eup %966  ;;  %v528_v8 = vadd.f32 1.0, %v965_v5  ;;  %v834_v9 = vmul.f32 -1.442695, %v473_v3  ;;  %595 = vadd.xlane.f32.xlu0 %v578_v4  ;;  %986 = vrcp.f32 %v529_v63  ;;  %v1254_v56 = vand.u32 127, %v659_v55  ;;  %s778_s21 = sshll.u32 %s1034_s6, 4  ;;  %s779_s21 = int_to_ptr.vmem [resolvable:$true] %s778_s21 }
  0xfe   :  { %v969_v10 = vpop.eup %968  ;;  %v531_v11 = vadd.f32 1.0, %v967_v7  ;;  %v833_v12 = vmul.f32 -1.442695, %v472_v6  ;;  %v1256_v59 = vshrl.u32 %v659_v55, 7  ;;  %s1010_s22 = scalar_lea.vmem %s779_s21, 16  ;;  %s1014_s23 = scalar_lea.vmem %s779_s21, 32 }
  0xff   :  { %v971_v13 = vpop.eup %970  ;;  %988 = vrcp.f32 %v528_v8  ;;  %v580_v14 = vmul.f32 %v969_v10, %v1234_v57  ;;  %v665_v60 = vadd.s32 4294967288, %v1254_v56  ;;  %v672_v62 = vadd.s32 4294967280, %v1254_v56  ;;  %p1011_p0 = scmp.ne.s32.totalorder %s779_s21, %s1010_s22  ;;  %p1015_p1 = scmp.lt.s32.totalorder %s779_s21, %s779_s21 }
 0x100   :  { %v973_v16 = vpop.eup %972  ;;  %990 = vrcp.f32 %v531_v11  ;;  %v579_v21 = vmul.f32 %v971_v13, %v1234_v57  ;;  %v679_v63 = vadd.s32 4294967272, %v1254_v56  ;;  %v663_v0 = vsub.s32 %v1254_v56, %v1256_v59  ;;  %p1016_p2 = scmp.lt.s32.totalorder %s1014_s23, %s1010_s22 }
 0x101   :  { %v975_v17 = vpop.eup %974  ;;  %v530_v18 = vadd.f32 1.0, %v973_v16  ;;  %992 = vpow2.f32 %v834_v9  ;;  %599 = vadd.xlane.f32.xlu1 %v580_v14  ;;  %593 = vadd.xlane.f32.xlu0 %v577_v15  ;;  %v686_v2 = vadd.s32 4294967264, %v1254_v56  ;;  %v668_v4 = vsub.s32 %v665_v60, %v1256_v59 }
 0x102   :  { %v977_v39 = vpop.eup %976  ;;  %v533_v19 = vadd.f32 1.0, %v975_v17  ;;  %994 = vpow2.f32 %v833_v12  ;;  %v675_v6 = vsub.s32 %v672_v62, %v1256_v59  ;;  %v693_v7 = vadd.s32 4294967256, %v1254_v56  ;;  %p1017_p3 = por %p1016_p2, %p1015_p1 }
 0x103   :  { %v979_v20 = vpop.eup %978  ;;  %996 = vrcp.f32 %v530_v18  ;;  %v582_v28 = vmul.f32 %v977_v39, %v1234_v57  ;;  %v682_v8 = vsub.s32 %v679_v63, %v1256_v59  ;;  %v689_v12 = vsub.s32 %v686_v2, %v1256_v59 }
 0x104   :  { %v981_v22 = vpop.eup %980  ;;  %v581_v23 = vmul.f32 %v979_v20, %v1234_v57  ;;  %998 = vrcp.f32 %v533_v19  ;;  %v700_v17 = vadd.s32 4294967248, %v1254_v56  ;;  %v696_v39 = vsub.s32 %v693_v7, %v1256_v59  ;;  %p1018_p4 = pnand %p1017_p3, %p1011_p0 }
 0x105   :  { %v983_v24 = vpop.eup %982  ;;  %v532_v25 = vadd.f32 1.0, %v981_v22  ;;  %597 = vadd.xlane.f32.xlu1 %v579_v21  ;;  %v707_v19 = vadd.s32 4294967240, %v1254_v56  ;;  %v749_v60 = vadd.s32 4294967192, %v1254_v56 }
 0x106   :  { %v535_v26 = vadd.f32 1.0, %v983_v24  ;;  %601 = vadd.xlane.f32.xlu0 %v581_v23  ;;  %v985_v27 = vpop.eup %984 }
 0x107   :  { %1000 = vrcp.f32 %v532_v25  ;;  %v987_v29 = vpop.eup %986  ;;  %v534_v30 = vadd.f32 1.0, %v985_v27  ;;  %v703_v27 = vsub.s32 %v700_v17, %v1256_v59  ;;  %v752_v7 = vsub.s32 %v749_v60, %v1256_v59 }
 0x108   :  { %1002 = vrcp.f32 %v535_v26  ;;  %v584_v35 = vmul.f32 %v987_v29, %v1234_v57 }
 0x109   :  { %v989_v31 = vpop.eup %988  ;;  %603 = vadd.xlane.f32.xlu1 %v582_v28  ;;  %1004 = vrcp.f32 %v534_v30  ;;  %v714_v28 = vadd.s32 4294967232, %v1254_v56 }
 0x10a   :  { %v991_v32 = vpop.eup %990  ;;  %v583_v33 = vmul.f32 %v989_v31, %v1234_v57 }
 0x10b   :  { %v993_v34 = vpop.eup %992  ;;  %v586_v42 = vmul.f32 %v991_v32, %v1234_v57  ;;  %v710_v32 = vsub.s32 %v707_v19, %v1256_v59 }
 0x10c   :  { %v995_v36 = vpop.eup %994  ;;  %v537_v37 = vadd.f32 1.0, %v993_v34  ;;  %605 = vadd.xlane.f32.xlu0 %v583_v33  ;;  %v721_v33 = vadd.s32 4294967224, %v1254_v56 }
 0x10d   :  { %v997_v38 = vpop.eup %996  ;;  %v536_v40 = vadd.f32 1.0, %v995_v36  ;;  %607 = vadd.xlane.f32.xlu1 %v584_v35 }
 0x10e   :  { %1006 = vrcp.f32 %v537_v37  ;;  %v585_v41 = vmul.f32 %v997_v38, %v1234_v57  ;;  %v999_v43 = vpop.eup %998 }
 0x10f   :  { %1008 = vrcp.f32 %v536_v40  ;;  %v588_v47 = vmul.f32 %v999_v43, %v1234_v57  ;;  %v717_v40 = vsub.s32 %v714_v28, %v1256_v59 }
 0x110   :  { %609 = vadd.xlane.f32.xlu0 %v585_v41  ;;  %v728_v41 = vadd.s32 4294967216, %v1254_v56 }
 0x111   :  { %v1001_v44 = vpop.eup %1000  ;;  %611 = vadd.xlane.f32.xlu1 %v586_v42 }
 0x112   :  { %v587_v45 = vmul.f32 %v1001_v44, %v1234_v57  ;;  %v1003_v46 = vpop.eup %1002  ;;  %v724_v44 = vsub.s32 %v721_v33, %v1256_v59 }
 0x113   :  { %v1005_v48 = vpop.eup %1004  ;;  %v590_v50 = vmul.f32 %v1003_v46, %v1234_v57 }
 0x114   :  { %613 = vadd.xlane.f32.xlu0 %v587_v45  ;;  %v589_v49 = vmul.f32 %v1005_v48, %v1234_v57  ;;  %v735_v45 = vadd.s32 4294967208, %v1254_v56 }
 0x115   :  { %615 = vadd.xlane.f32.xlu1 %v588_v47 }
 0x118   :  { %v1007_v51 = vpop.eup %1006  ;;  %617 = vadd.xlane.f32.xlu0 %v589_v49 }
 0x119   :  { %v1009_v52 = vpop.eup %1008  ;;  %619 = vadd.xlane.f32.xlu1 %v590_v50  ;;  %v592_v54 = vmul.f32 %v1007_v51, %v1234_v57 }
 0x11a   :  { %v591_v53 = vmul.f32 %v1009_v52, %v1234_v57  ;;  %v731_v52 = vsub.s32 %v728_v41, %v1256_v59 }
 0x11c   :  { %621 = vadd.xlane.f32.xlu0 %v591_v53  ;;  %v742_v53 = vadd.s32 4294967200, %v1254_v56 }
 0x11d   :  { %623 = vadd.xlane.f32.xlu1 %v592_v54 }
 0x18a   :  { %v596_v58 = vpop.xlane.xlu0 %595 }
 0x18b   :  { %v628_v5 = vadd.f32 %v1262_v61, %v596_v58  ;;  %v738_v58 = vsub.s32 %v735_v45, %v1256_v59 }
 0x18d   :  { %v669_v15 = vrot.slane %v628_v5, %v668_v4  ;;  %v756_v4 = vadd.s32 4294967184, %v1254_v56 }
 0x18e   :  { %v600_v57 = vpop.xlane.xlu1 %599  ;;  %v594_v1 = vpop.xlane.xlu0 %593 }
 0x18f   :  { %v627_v3 = vadd.f32 %v1262_v61, %v594_v1  ;;  %v630_v9 = vadd.f32 %v1262_v61, %v600_v57 }
 0x191   :  { %v664_v10 = vrot.slane %v627_v3, %v663_v0  ;;  %v683_v20 = vrot.slane %v630_v9, %v682_v8  ;;  %v745_v3 = vsub.s32 %v742_v53, %v1256_v59  ;;  %v763_v8 = vadd.s32 4294967176, %v1254_v56 }
 0x192   :  { %v598_v11 = vpop.xlane.xlu1 %597 }
 0x193   :  { %v629_v13 = vadd.f32 %v1262_v61, %v598_v11  ;;  %v602_v14 = vpop.xlane.xlu0 %601  ;;  %v671_v21 = vsel %vm670_vm2, %v669_v15, %v664_v10  ;;  %v759_v15 = vsub.s32 %v756_v4, %v1256_v59 }
 0x194   :  { %v631_v16 = vadd.f32 %v1262_v61, %v602_v14 }
 0x195   :  { %v676_v18 = vrot.slane %v629_v13, %v675_v6 }
 0x196   :  { %v690_v22 = vrot.slane %v631_v16, %v689_v12  ;;  %v604_v23 = vpop.xlane.xlu1 %603 }
 0x197   :  { %v678_v24 = vsel %vm677_vm3, %v676_v18, %v671_v21  ;;  %v632_v25 = vadd.f32 %v1262_v61, %v604_v23  ;;  %v766_v18 = vsub.s32 %v763_v8, %v1256_v59 }
 0x198   :  { %v685_v26 = vsel %vm684_vm4, %v683_v20, %v678_v24 }
 0x199   :  { %v692_v29 = vsel %vm691_vm5, %v690_v22, %v685_v26  ;;  %v697_v30 = vrot.slane %v632_v25, %v696_v39  ;;  %v606_v31 = vpop.xlane.xlu0 %605 }
 0x19a   :  { %v633_v34 = vadd.f32 %v1262_v61, %v606_v31  ;;  %v608_v35 = vpop.xlane.xlu1 %607 }
 0x19b   :  { %v699_v36 = vsel %vm698_vm6, %v697_v30, %v692_v29  ;;  %v634_v37 = vadd.f32 %v1262_v61, %v608_v35 }
 0x19c   :  { %v704_v38 = vrot.slane %v633_v34, %v703_v27 }
 0x19d   :  { %v711_v42 = vrot.slane %v634_v37, %v710_v32  ;;  %v610_v43 = vpop.xlane.xlu0 %609 }
 0x19e   :  { %v706_v46 = vsel %vm705_vm7, %v704_v38, %v699_v36  ;;  %v635_v47 = vadd.f32 %v1262_v61, %v610_v43  ;;  %v612_v48 = vpop.xlane.xlu1 %611 }
 0x19f   :  { %v713_v49 = vsel %vm712_vm8, %v711_v42, %v706_v46  ;;  %v636_v50 = vadd.f32 %v1262_v61, %v612_v48 }
 0x1a0   :  { %v718_v51 = vrot.slane %v635_v47, %v717_v40 }
 0x1a1   :  { %v725_v54 = vrot.slane %v636_v50, %v724_v44  ;;  %v614_v55 = vpop.xlane.xlu0 %613 }
 0x1a2   :  { %v720_v62 = vsel %vm719_vm9, %v718_v51, %v713_v49  ;;  %v637_v63 = vadd.f32 %v1262_v61, %v614_v55  ;;  %v616_v57 = vpop.xlane.xlu1 %615 }
 0x1a3   :  { %v727_v0 = vsel %vm726_vm10, %v725_v54, %v720_v62  ;;  %v638_v1 = vadd.f32 %v1262_v61, %v616_v57 }
 0x1a4   :  { %v732_v2 = vrot.slane %v637_v63, %v731_v52 }
 0x1a5   :  { %v739_v5 = vrot.slane %v638_v1, %v738_v58  ;;  %v618_v6 = vpop.xlane.xlu0 %617 }
 0x1a6   :  { %v734_v9 = vsel %vm733_vm11, %v732_v2, %v727_v0  ;;  %v639_v10 = vadd.f32 %v1262_v61, %v618_v6  ;;  %v620_v11 = vpop.xlane.xlu1 %619 }
 0x1a7   :  { %v741_v12 = vsel %vm740_vm12, %v739_v5, %v734_v9  ;;  %v640_v13 = vadd.f32 %v1262_v61, %v620_v11 }
 0x1a8   :  { %v746_v14 = vrot.slane %v639_v10, %v745_v3 }
 0x1a9   :  { %v753_v16 = vrot.slane %v640_v13, %v752_v7  ;;  %v622_v17 = vpop.xlane.xlu0 %621 }
 0x1aa   :  { %v748_v39 = vsel %vm747_vm13, %v746_v14, %v741_v12  ;;  %v641_v19 = vadd.f32 %v1262_v61, %v622_v17  ;;  %v624_v56 = vpop.xlane.xlu1 %623 }
 0x1ab   :  { %v642_v20 = vadd.f32 %v1262_v61, %v624_v56  ;;  %v755_v21 = vsel %vm754_vm14, %v753_v16, %v748_v39 }
 0x1ac   :  { %v760_v22 = vrot.slane %v641_v19, %v759_v15 }
 0x1ad   :  { %v767_v23 = vrot.slane %v642_v20, %v766_v18 }
 0x1ae   :  { %v762_v24 = vsel %vm761_vm15, %v760_v22, %v755_v21 }
 0x1af   :  { %v769_v25 = vsel %vm768_vm0, %v767_v23, %v762_v24 }
 0x1b0   :  { %771 = vst [vmem:[#allocation3] sm:$0x1] %v769_v25 }
 0x1b1   :  { %1021 = shalt.err (!%p1018_p4)
}
 0x1b2   :  { %s1022_s26 = scalar_lea.hbm %s1330_s7, 16 }
 0x1b3   :  { %p1023_p5 = scmp.ne.s32.totalorder %s1330_s7, %s1022_s26  ;;  %p1026_p6 = scmp.lt.u32.totalorder %s1022_s26, %s1330_s7 }
 0x1b5   :  { %p1028_p7 = pnand %p1026_p6, %p1023_p5 }
 0x1b7   :  { %1031 = shalt.err (!%p1028_p7)
}
 0x1b8   :  { %781 = dma.vmem_to_hbm [thread:$0]  %s779_s21, 16, %s1330_s7, [#allocation4]  }
 0x1b9   :  { %1032 = dma.done.wait [#allocation4], 16  }
 0x1ba   :  { %1033 = vsyncadd [#allocation4], 4294967280 }
 0x1bb   :  { %785 = vsyncpa [#allocation4], 1 }

</bundles_post_ra>
